<compile_context>
chip_gen: v7x
topology: tpu7x:2x2x1
jax: 0.10.0
libtpu: 0.0.40
codegen_flags: <defaults>
</compile_context>

<pallas_src>
import numpy as np
import jax
import jax.numpy as jnp
from jax.experimental import pallas as pl
from jax.experimental.pallas import tpu as pltpu


PAD_ROWS = 8  # sublane tile; vertices are coordinate-major (8, N), rows 3..7 are padding


# ----------------------------------------------------------------------------- fused kernel

def fused_energy_kernel(q_ref, t_ref, scal_ref,          # SMEM inputs
                        v_ref, vinit_ref, lap_ref,        # VMEM inputs
                        img_ref, depth_ref,               # VMEM inputs
                        vt_ref, diff_img_ref, e_ref):     # outputs
    """Single fused forward pass.

    q_ref: (4,) SMEM, t_ref: (3,) SMEM, scal_ref: (3,) SMEM = [depth_scale, max_depth, cregu]
    v_ref / vinit_ref: (8, N) VMEM coordinate-major vertices (rows 3..7 padding)
    lap_ref: (N, N) bf16 VMEM symmetric graph Laplacian (exact small integers)
    img_ref / depth_ref / diff_img_ref: (H, W) VMEM
    vt_ref: (3, N) VMEM transformed vertices (coordinate-major)
    e_ref: (3,) SMEM = [loss, energy_data, energy_rigid]
    """
    # ---- 1. quaternion normalize + center + qrot + translate -----------------
    qx, qy, qz, qw = q_ref[0], q_ref[1], q_ref[2], q_ref[3]
    inv_norm = jax.lax.rsqrt(qx * qx + qy * qy + qz * qz + qw * qw)
    qx, qy, qz, qw = qx * inv_norm, qy * inv_norm, qz * inv_norm, qw * inv_norm

    v3 = v_ref[0:3, :]                               # (3, N) real coordinates
    mean = jnp.mean(v3, axis=1, keepdims=True)       # (3, 1) per-coordinate mean
    vc = v3 - mean                                   # vertices_centered
    vx, vy, vz = vc[0:1, :], vc[1:2, :], vc[2:3, :]  # (1, N) each

    # uv = cross(qvec, v)
    uvx = qy * vz - qz * vy
    uvy = qz * vx - qx * vz
    uvz = qx * vy - qy * vx
    # uuv = cross(qvec, uv)
    uuvx = qy * uvz - qz * uvy
    uuvy = qz * uvx - qx * uvz
    uuvz = qx * uvy - qy * uvx

    # direct row stores (fine at this size per review; revisit only if N >> 10^4)
    vt_ref[0:1, :] = vx + 2.0 * (qw * uvx + uuvx) + t_ref[0]
    vt_ref[1:2, :] = vy + 2.0 * (qw * uvy + uuvy) + t_ref[1]
    vt_ref[2:3, :] = vz + 2.0 * (qw * uvz + uuvz) + t_ref[2]

    # ---- 2. depth data energy -------------------------------------------------
    depth_scale = scal_ref[0]
    max_depth = scal_ref[1]
    cregu = scal_ref[2]

    d = jnp.clip(depth_ref[...] * depth_scale, 0.0, max_depth)
    df = d - img_ref[...]
    sq = df * df
    diff_img_ref[...] = sq                 # diff_image (channel dim of size 1 summed out)
    e_data = jnp.sum(sq)

    # ---- 3. Laplacian rigid energy: 0.5 * cregu * ||L @ (V - Vinit)||_F^2 -----
    # Register-only LHS construction: no scratch, no store->load round trip.
    # Padded sublanes (rows 3..7) are masked to zero so they contribute nothing.
    row = jax.lax.broadcasted_iota(jnp.int32, v_ref.shape, 0)        # (8, N)
    diff8 = jnp.where(row < 3, v_ref[...] - vinit_ref[...], 0.0)     # (8, N) f32
    # L shipped bf16 (exact integers), upcast once in registers -> f32 matmul,
    # numerically identical to the all-f32 path.
    lap_f32 = lap_ref[...].astype(jnp.float32)                       # (N, N)
    # L is symmetric, so diff_cm @ L == (L @ diff)^T  (lane-dense (8, N) output).
    r = jnp.dot(diff8, lap_f32, preferred_element_type=jnp.float32)
    e_rigid = 0.5 * cregu * jnp.sum(r * r)

    # ---- 4. total loss (computed in-kernel) -----------------------------------
    e_ref[0] = e_data + e_rigid
    e_ref[1] = e_data
    e_ref[2] = e_rigid


# ----------------------------------------------------------------------------- wrapper

def mesh_depth_fitter_energy_forward(quaternion, translation, scalars,
                                     vertices_pad, vertices_init_pad, laplacian_bf16,
                                     mesh_image, depth_raw):
    """Fused forward. vertices_pad / vertices_init_pad are coordinate-major (8, N)."""
    N = vertices_pad.shape[1]
    H, W = depth_raw.shape

    # Advisory cost hint so XLA can overlap this µs-scale call with surrounding work.
    cost = pl.CostEstimate(
        flops=2 * PAD_ROWS * N * N + 6 * H * W + 64 * N,
        transcendentals=1,
        bytes_accessed=(2 * PAD_ROWS * N * 4      # vertices + vertices_init (f32)
                        + N * N * 2               # Laplacian (bf16)
                        + 2 * H * W * 4           # mesh_image + depth_raw (f32)
                        + 3 * N * 4               # vt out
                        + H * W * 4               # diff_image out
                        + 64),                    # scalars + energies
    )

    vt_cm, diff_image, energies = pl.pallas_call(
        fused_energy_kernel,
        out_shape=(jax.ShapeDtypeStruct((3, N), jnp.float32),
                   jax.ShapeDtypeStruct((H, W), jnp.float32),
                   jax.ShapeDtypeStruct((3,), jnp.float32)),
        in_specs=[
            pl.BlockSpec(memory_space=pltpu.MemorySpace.SMEM),  # quaternion (4,)
            pl.BlockSpec(memory_space=pltpu.MemorySpace.SMEM),  # translation (3,)
            pl.BlockSpec(memory_space=pltpu.MemorySpace.SMEM),  # scalars (3,)
            pl.BlockSpec(memory_space=pltpu.MemorySpace.VMEM),  # vertices_pad (8, N)
            pl.BlockSpec(memory_space=pltpu.MemorySpace.VMEM),  # vertices_init_pad (8, N)
            pl.BlockSpec(memory_space=pltpu.MemorySpace.VMEM),  # laplacian (N, N) bf16
            pl.BlockSpec(memory_space=pltpu.MemorySpace.VMEM),  # mesh_image (H, W)
            pl.BlockSpec(memory_space=pltpu.MemorySpace.VMEM),  # depth_raw (H, W)
        ],
        out_specs=(pl.BlockSpec(memory_space=pltpu.MemorySpace.VMEM),
                   pl.BlockSpec(memory_space=pltpu.MemorySpace.VMEM),
                   pl.BlockSpec(memory_space=pltpu.MemorySpace.SMEM)),
        cost_estimate=cost,
    )(quaternion, translation, scalars, vertices_pad, vertices_init_pad,
      laplacian_bf16, mesh_image, depth_raw)

    loss = energies[0]
    energy_data = energies[1]
    energy_rigid = energies[2]
    return loss, vt_cm, diff_image, energy_data, energy_rigid


# ----------------------------------------------------------------------------- glue / setup

def make_grid_mesh(rows, cols):
    ii, jj = np.meshgrid(np.arange(rows), np.arange(cols), indexing="ij")
    x = jj.astype(np.float64) / (cols - 1) - 0.5
    y = ii.astype(np.float64) / (rows - 1) - 0.5
    z = 0.1 * np.sin(2.0 * np.pi * x) * np.cos(2.0 * np.pi * y)
    vertices = np.stack([x.ravel(), y.ravel(), z.ravel()], axis=1)
    faces = []
    vid = lambda i, j: i * cols + j
    for i in range(rows - 1):
        for j in range(cols - 1):
            faces.append([vid(i, j), vid(i + 1, j), vid(i, j + 1)])
            faces.append([vid(i + 1, j), vid(i + 1, j + 1), vid(i, j + 1)])
    return vertices, np.asarray(faces, dtype=np.int32)


def graph_laplacian(faces, n):
    adj = np.zeros((n, n), dtype=np.float64)
    for f in faces:
        for a, b in ((f[0], f[1]), (f[1], f[2]), (f[2], f[0])):
            adj[a, b] = 1.0
            adj[b, a] = 1.0
    return np.diag(adj.sum(axis=1)) - adj            # symmetric


def euler_zyx_to_quat(euler):
    """scipy Rotation.from_euler('zyx', e).as_quat() equivalent, (x, y, z, w)."""
    a, b, c = euler
    qz = np.array([0.0, 0.0, np.sin(a / 2), np.cos(a / 2)])
    qy = np.array([0.0, np.sin(b / 2), 0.0, np.cos(b / 2)])
    qx = np.array([np.sin(c / 2), 0.0, 0.0, np.cos(c / 2)])

    def qmul(q1, q2):
        x1, y1, z1, w1 = q1
        x2, y2, z2, w2 = q2
        return np.array([
            w1 * x2 + x1 * w2 + y1 * z2 - z1 * y2,
            w1 * y2 - x1 * z2 + y1 * w2 + z1 * x2,
            w1 * z2 + x1 * y2 - y1 * x2 + z1 * w2,
            w1 * w2 - x1 * x2 - y1 * y2 - z1 * z2,
        ])

    return qmul(qx, qmul(qy, qz))


def forward_reference(vertices, quaternion, translation, vertices_init, laplacian,
                      mesh_image, depth_raw, max_depth, depth_scale, cregu):
    """Pure-JAX reference in the original (N, 3) orientation, all f32."""
    q = quaternion / jnp.linalg.norm(quaternion)
    vc = vertices - jnp.mean(vertices, axis=0, keepdims=True)
    qvec = jnp.broadcast_to(q[:3], vc.shape)
    uv = jnp.cross(qvec, vc)
    uuv = jnp.cross(qvec, uv)
    v_t = vc + 2.0 * (q[3] * uv + uuv) + translation
    d = jnp.clip(depth_raw * depth_scale, 0.0, max_depth)
    diff_image = (d - mesh_image) ** 2
    e_data = jnp.sum(diff_image)
    diff = vertices - vertices_init
    r = laplacian @ diff
    e_rigid = 0.5 * cregu * jnp.sum(r * r)
    return e_data + e_rigid, v_t, e_data, e_rigid


# ----------------------------------------------------------------------------- main

if __name__ == "__main__":
    rows, cols = 8, 16                    # N = 128 vertices
    H, W = 16, 128                        # depth / image resolution
    max_depth = 5.0
    depth_scale = 1.0
    cregu = 2000.0

    vertices_np, faces_np = make_grid_mesh(rows, cols)
    n_vertices = vertices_np.shape[0]
    laplacian_np = graph_laplacian(faces_np, n_vertices)
    # The kernel relies on diff_cm @ L == (L @ diff)^T, which needs L symmetric.
    assert np.allclose(laplacian_np, laplacian_np.T), "graph Laplacian must be symmetric"

    euler_init = np.array([0.1, -0.2, 0.3])
    translation_init = np.array([0.0, 0.0, 4.0])
    quat_init = euler_zyx_to_quat(euler_init)

    key = jax.random.PRNGKey(0)
    k1, k2, k3 = jax.random.split(key, 3)

    # One-time layout plumbing (outside jit): coordinate-major, sublane-padded (8, N),
    # f32 cast once. bf16 Laplacian entries are small integers -> exact.
    vertices_init_pad_np = np.zeros((PAD_ROWS, n_vertices), dtype=np.float32)
    vertices_init_pad_np[:3] = vertices_np.T
    vertices_init_pad = jnp.asarray(vertices_init_pad_np)                    # (8, N)
    noise = 0.01 * jax.random.normal(k1, (3, n_vertices), jnp.float32)
    vertices_pad = vertices_init_pad.at[:3].set(vertices_init_pad[:3] + noise)  # perturbed param

    quaternion = jnp.asarray(quat_init, jnp.float32)
    translation = jnp.asarray(translation_init, jnp.float32)
    laplacian_f32 = jnp.asarray(laplacian_np, jnp.float32)
    laplacian_bf16 = jnp.asarray(laplacian_np, jnp.bfloat16)                 # shipped bf16, exact
    mesh_image = max_depth * jax.random.uniform(k2, (H, W), jnp.float32)
    depth_raw = max_depth * jax.random.uniform(k3, (H, W), jnp.float32)      # render stand-in
    scalars = jnp.array([depth_scale, max_depth, cregu], jnp.float32)

    fwd = jax.jit(mesh_depth_fitter_energy_forward)
    loss, v_t_cm, diff_image, e_data, e_rigid = fwd(
        quaternion, translation, scalars, vertices_pad, vertices_init_pad,
        laplacian_bf16, mesh_image, depth_raw)
    jax.block_until_ready((loss, v_t_cm, diff_image, e_data, e_rigid))

    # reference check (pure JAX, f32, original (N, 3) orientation)
    loss_ref, v_t_ref, e_data_ref, e_rigid_ref = forward_reference(
        vertices_pad[:3].T, quaternion, translation, vertices_init_pad[:3].T,
        laplacian_f32, mesh_image, depth_raw, max_depth, depth_scale, cregu)

    np.testing.assert_allclose(np.asarray(v_t_cm), np.asarray(v_t_ref.T),
                               rtol=1e-4, atol=1e-5)
    np.testing.assert_allclose(np.asarray(e_data), np.asarray(e_data_ref),
                               rtol=1e-3, atol=1e-3)
    np.testing.assert_allclose(np.asarray(e_rigid), np.asarray(e_rigid_ref),
                               rtol=1e-3, atol=1e-3)
    np.testing.assert_allclose(np.asarray(loss), np.asarray(loss_ref),
                               rtol=1e-3, atol=1e-3)

    print("KERNEL_OK")
</pallas_src>

<mosaic_0001>
module attributes {stable_mosaic.version = 11 : i64} {
  func.func @fused_energy_kernel(%arg0: memref<4xf32, #tpu.memory_space<smem>>, %arg1: memref<3xf32, #tpu.memory_space<smem>>, %arg2: memref<3xf32, #tpu.memory_space<smem>>, %arg3: memref<8x128xf32, #tpu.memory_space<vmem>>, %arg4: memref<8x128xf32, #tpu.memory_space<vmem>>, %arg5: memref<128x128xbf16, #tpu.memory_space<vmem>>, %arg6: memref<16x128xf32, #tpu.memory_space<vmem>>, %arg7: memref<16x128xf32, #tpu.memory_space<vmem>>, %arg8: memref<3x128xf32, #tpu.memory_space<vmem>>, %arg9: memref<16x128xf32, #tpu.memory_space<vmem>>, %arg10: memref<3xf32, #tpu.memory_space<smem>>) attributes {dimension_semantics = [], scalar_prefetch = 0 : i64, scratch_operands = 0 : i64, tpu.core_type = #tpu.core_type<tc>} {
    %c0 = arith.constant 0 : index
    %0 = memref.load %arg0[%c0] : memref<4xf32, #tpu.memory_space<smem>>
    %c1 = arith.constant 1 : index
    %1 = memref.load %arg0[%c1] : memref<4xf32, #tpu.memory_space<smem>>
    %c2 = arith.constant 2 : index
    %2 = memref.load %arg0[%c2] : memref<4xf32, #tpu.memory_space<smem>>
    %c3 = arith.constant 3 : index
    %3 = memref.load %arg0[%c3] : memref<4xf32, #tpu.memory_space<smem>>
    %4 = arith.mulf %0, %0 : f32
    %5 = arith.mulf %1, %1 : f32
    %6 = arith.addf %4, %5 : f32
    %7 = arith.mulf %2, %2 : f32
    %8 = arith.addf %6, %7 : f32
    %9 = arith.mulf %3, %3 : f32
    %10 = arith.addf %8, %9 : f32
    %11 = math.rsqrt %10 : f32
    %12 = arith.mulf %0, %11 : f32
    %13 = arith.mulf %1, %11 : f32
    %14 = arith.mulf %2, %11 : f32
    %15 = arith.mulf %3, %11 : f32
    %c0_0 = arith.constant 0 : index
    %c0_1 = arith.constant 0 : index
    %16 = vector.load %arg3[%c0_0, %c0_1] : memref<8x128xf32, #tpu.memory_space<vmem>>, vector<3x128xf32>
    %cst = arith.constant dense<0.000000e+00> : vector<3xf32>
    %17 = vector.multi_reduction <add>, %16, %cst [1] : vector<3x128xf32> to vector<3xf32>
    %18 = vector.shape_cast %17 : vector<3xf32> to vector<3x1xf32>
    %cst_2 = arith.constant 1.280000e+02 : f32
    %19 = vector.broadcast %cst_2 : f32 to vector<3x1xf32>
    %20 = arith.divf %18, %19 : vector<3x1xf32>
    %21 = vector.broadcast %20 : vector<3x1xf32> to vector<3x128xf32>
    %22 = arith.subf %16, %21 : vector<3x128xf32>
    %23 = vector.extract_strided_slice %22 {offsets = [0, 0], sizes = [1, 128], strides = [1, 1]} : vector<3x128xf32> to vector<1x128xf32>
    %24 = vector.extract_strided_slice %22 {offsets = [1, 0], sizes = [1, 128], strides = [1, 1]} : vector<3x128xf32> to vector<1x128xf32>
    %25 = vector.extract_strided_slice %22 {offsets = [2, 0], sizes = [1, 128], strides = [1, 1]} : vector<3x128xf32> to vector<1x128xf32>
    %26 = vector.broadcast %13 : f32 to vector<1x128xf32>
    %27 = arith.mulf %26, %25 : vector<1x128xf32>
    %28 = vector.broadcast %14 : f32 to vector<1x128xf32>
    %29 = arith.mulf %28, %24 : vector<1x128xf32>
    %30 = arith.subf %27, %29 : vector<1x128xf32>
    %31 = vector.broadcast %14 : f32 to vector<1x128xf32>
    %32 = arith.mulf %31, %23 : vector<1x128xf32>
    %33 = vector.broadcast %12 : f32 to vector<1x128xf32>
    %34 = arith.mulf %33, %25 : vector<1x128xf32>
    %35 = arith.subf %32, %34 : vector<1x128xf32>
    %36 = vector.broadcast %12 : f32 to vector<1x128xf32>
    %37 = arith.mulf %36, %24 : vector<1x128xf32>
    %38 = vector.broadcast %13 : f32 to vector<1x128xf32>
    %39 = arith.mulf %38, %23 : vector<1x128xf32>
    %40 = arith.subf %37, %39 : vector<1x128xf32>
    %41 = vector.broadcast %13 : f32 to vector<1x128xf32>
    %42 = arith.mulf %41, %40 : vector<1x128xf32>
    %43 = vector.broadcast %14 : f32 to vector<1x128xf32>
    %44 = arith.mulf %43, %35 : vector<1x128xf32>
    %45 = arith.subf %42, %44 : vector<1x128xf32>
    %46 = vector.broadcast %14 : f32 to vector<1x128xf32>
    %47 = arith.mulf %46, %30 : vector<1x128xf32>
    %48 = vector.broadcast %12 : f32 to vector<1x128xf32>
    %49 = arith.mulf %48, %40 : vector<1x128xf32>
    %50 = arith.subf %47, %49 : vector<1x128xf32>
    %51 = vector.broadcast %12 : f32 to vector<1x128xf32>
    %52 = arith.mulf %51, %35 : vector<1x128xf32>
    %53 = vector.broadcast %13 : f32 to vector<1x128xf32>
    %54 = arith.mulf %53, %30 : vector<1x128xf32>
    %55 = arith.subf %52, %54 : vector<1x128xf32>
    %56 = vector.broadcast %15 : f32 to vector<1x128xf32>
    %57 = arith.mulf %56, %30 : vector<1x128xf32>
    %58 = arith.addf %57, %45 : vector<1x128xf32>
    %cst_3 = arith.constant 2.000000e+00 : f32
    %59 = vector.broadcast %cst_3 : f32 to vector<1x128xf32>
    %60 = arith.mulf %59, %58 : vector<1x128xf32>
    %61 = arith.addf %23, %60 : vector<1x128xf32>
    %c0_4 = arith.constant 0 : index
    %62 = memref.load %arg1[%c0_4] : memref<3xf32, #tpu.memory_space<smem>>
    %63 = vector.broadcast %62 : f32 to vector<1x128xf32>
    %64 = arith.addf %61, %63 : vector<1x128xf32>
    %c0_5 = arith.constant 0 : index
    %c0_6 = arith.constant 0 : index
    %65 = vector.load %arg8[%c0_5, %c0_6] : memref<3x128xf32, #tpu.memory_space<vmem>>, vector<1x128xf32>
    tpu.vector_store %arg8[%c0_5, %c0_6], %64 {strides = array<i32>} : memref<3x128xf32, #tpu.memory_space<vmem>>, vector<1x128xf32>,
    %66 = vector.broadcast %15 : f32 to vector<1x128xf32>
    %67 = arith.mulf %66, %35 : vector<1x128xf32>
    %68 = arith.addf %67, %50 : vector<1x128xf32>
    %cst_7 = arith.constant 2.000000e+00 : f32
    %69 = vector.broadcast %cst_7 : f32 to vector<1x128xf32>
    %70 = arith.mulf %69, %68 : vector<1x128xf32>
    %71 = arith.addf %24, %70 : vector<1x128xf32>
    %c1_8 = arith.constant 1 : index
    %72 = memref.load %arg1[%c1_8] : memref<3xf32, #tpu.memory_space<smem>>
    %73 = vector.broadcast %72 : f32 to vector<1x128xf32>
    %74 = arith.addf %71, %73 : vector<1x128xf32>
    %c1_9 = arith.constant 1 : index
    %c0_10 = arith.constant 0 : index
    %75 = vector.load %arg8[%c1_9, %c0_10] : memref<3x128xf32, #tpu.memory_space<vmem>>, vector<1x128xf32>
    tpu.vector_store %arg8[%c1_9, %c0_10], %74 {strides = array<i32>} : memref<3x128xf32, #tpu.memory_space<vmem>>, vector<1x128xf32>,
    %76 = vector.broadcast %15 : f32 to vector<1x128xf32>
    %77 = arith.mulf %76, %40 : vector<1x128xf32>
    %78 = arith.addf %77, %55 : vector<1x128xf32>
    %cst_11 = arith.constant 2.000000e+00 : f32
    %79 = vector.broadcast %cst_11 : f32 to vector<1x128xf32>
    %80 = arith.mulf %79, %78 : vector<1x128xf32>
    %81 = arith.addf %25, %80 : vector<1x128xf32>
    %c2_12 = arith.constant 2 : index
    %82 = memref.load %arg1[%c2_12] : memref<3xf32, #tpu.memory_space<smem>>
    %83 = vector.broadcast %82 : f32 to vector<1x128xf32>
    %84 = arith.addf %81, %83 : vector<1x128xf32>
    %c2_13 = arith.constant 2 : index
    %c0_14 = arith.constant 0 : index
    %85 = vector.load %arg8[%c2_13, %c0_14] : memref<3x128xf32, #tpu.memory_space<vmem>>, vector<1x128xf32>
    tpu.vector_store %arg8[%c2_13, %c0_14], %84 {strides = array<i32>} : memref<3x128xf32, #tpu.memory_space<vmem>>, vector<1x128xf32>,
    %c0_15 = arith.constant 0 : index
    %86 = memref.load %arg2[%c0_15] : memref<3xf32, #tpu.memory_space<smem>>
    %c1_16 = arith.constant 1 : index
    %87 = memref.load %arg2[%c1_16] : memref<3xf32, #tpu.memory_space<smem>>
    %c2_17 = arith.constant 2 : index
    %88 = memref.load %arg2[%c2_17] : memref<3xf32, #tpu.memory_space<smem>>
    %c0_18 = arith.constant 0 : index
    %c0_19 = arith.constant 0 : index
    %89 = vector.load %arg7[%c0_18, %c0_19] : memref<16x128xf32, #tpu.memory_space<vmem>>, vector<16x128xf32>
    %90 = vector.broadcast %86 : f32 to vector<16x128xf32>
    %91 = arith.mulf %89, %90 : vector<16x128xf32>
    %cst_20 = arith.constant 0.000000e+00 : f32
    %92 = vector.broadcast %cst_20 : f32 to vector<16x128xf32>
    %93 = arith.maximumf %92, %91 : vector<16x128xf32>
    %94 = vector.broadcast %87 : f32 to vector<16x128xf32>
    %95 = arith.minimumf %94, %93 : vector<16x128xf32>
    %c0_21 = arith.constant 0 : index
    %c0_22 = arith.constant 0 : index
    %96 = vector.load %arg6[%c0_21, %c0_22] : memref<16x128xf32, #tpu.memory_space<vmem>>, vector<16x128xf32>
    %97 = arith.subf %95, %96 : vector<16x128xf32>
    %98 = arith.mulf %97, %97 : vector<16x128xf32>
    %c0_23 = arith.constant 0 : index
    %c0_24 = arith.constant 0 : index
    %99 = vector.load %arg9[%c0_23, %c0_24] : memref<16x128xf32, #tpu.memory_space<vmem>>, vector<16x128xf32>
    tpu.vector_store %arg9[%c0_23, %c0_24], %98 {strides = array<i32>} : memref<16x128xf32, #tpu.memory_space<vmem>>, vector<16x128xf32>,
    %100 = vector.shape_cast %98 : vector<16x128xf32> to vector<1x16x128xf32>
    %cst_25 = arith.constant dense<0.000000e+00> : vector<1xf32>
    %101 = vector.multi_reduction <add>, %100, %cst_25 [1, 2] : vector<1x16x128xf32> to vector<1xf32>
    %102 = vector.shape_cast %101 : vector<1xf32> to vector<1x1x1xf32>
    %103 = vector.extract %102[0, 0, 0] : f32 from vector<1x1x1xf32>
    %104 = tpu.iota {dimensions = array<i32: 0>} : vector<8x128xi32>
    %c3_i32 = arith.constant 3 : i32
    %105 = vector.broadcast %c3_i32 : i32 to vector<8x128xi32>
    %106 = arith.cmpi slt, %104, %105 : vector<8x128xi32>
    %c0_26 = arith.constant 0 : index
    %c0_27 = arith.constant 0 : index
    %107 = vector.load %arg3[%c0_26, %c0_27] : memref<8x128xf32, #tpu.memory_space<vmem>>, vector<8x128xf32>
    %c0_28 = arith.constant 0 : index
    %c0_29 = arith.constant 0 : index
    %108 = vector.load %arg4[%c0_28, %c0_29] : memref<8x128xf32, #tpu.memory_space<vmem>>, vector<8x128xf32>
    %109 = arith.subf %107, %108 : vector<8x128xf32>
    %cst_30 = arith.constant 0.000000e+00 : f32
    %110 = vector.broadcast %cst_30 : f32 to vector<8x128xf32>
    %111 = arith.select %106, %109, %110 : vector<8x128xi1>, vector<8x128xf32>
    %c0_31 = arith.constant 0 : index
    %c0_32 = arith.constant 0 : index
    %112 = vector.load %arg5[%c0_31, %c0_32] : memref<128x128xbf16, #tpu.memory_space<vmem>>, vector<128x128xbf16>
    %113 = arith.extf %112 : vector<128x128xbf16> to vector<128x128xf32>
    %cst_33 = arith.constant dense<0.000000e+00> : vector<8x128xf32>
    %114 = tpu.matmul %111, %113, %cst_33 {dimension_numbers = #tpu.dot_dimension_numbers<[1], [0], [0], [1], [0, 0, 1, 1], [], []>} : vector<8x128xf32>, vector<128x128xf32>, vector<8x128xf32> -> vector<8x128xf32>
    %cst_34 = arith.constant 5.000000e-01 : f32
    %115 = arith.mulf %cst_34, %88 : f32
    %116 = arith.mulf %114, %114 : vector<8x128xf32>
    %117 = vector.shape_cast %116 : vector<8x128xf32> to vector<1x8x128xf32>
    %cst_35 = arith.constant dense<0.000000e+00> : vector<1xf32>
    %118 = vector.multi_reduction <add>, %117, %cst_35 [1, 2] : vector<1x8x128xf32> to vector<1xf32>
    %119 = vector.shape_cast %118 : vector<1xf32> to vector<1x1x1xf32>
    %120 = vector.extract %119[0, 0, 0] : f32 from vector<1x1x1xf32>
    %121 = arith.mulf %115, %120 : f32
    %122 = arith.addf %103, %121 : f32
    %c0_36 = arith.constant 0 : index
    %123 = memref.load %arg10[%c0_36] : memref<3xf32, #tpu.memory_space<smem>>
    memref.store %122, %arg10[%c0_36] : memref<3xf32, #tpu.memory_space<smem>>
    %c1_37 = arith.constant 1 : index
    %124 = memref.load %arg10[%c1_37] : memref<3xf32, #tpu.memory_space<smem>>
    memref.store %103, %arg10[%c1_37] : memref<3xf32, #tpu.memory_space<smem>>
    %c2_38 = arith.constant 2 : index
    %125 = memref.load %arg10[%c2_38] : memref<3xf32, #tpu.memory_space<smem>>
    memref.store %121, %arg10[%c2_38] : memref<3xf32, #tpu.memory_space<smem>>
    return
  }
}

</mosaic_0001>

<bundles_post_ra>
// kernel: mesh_depth_fitter_energy_forward.1
= control target key start
LH: loop header
LB: loop body
LE: loop exit
PB: predicated region body
PF: predicated region fallthrough
CT: control target
= control target key end

     0   :  { %16 = vsyncpa [#allocation5], 0  ;;  %s1002_s0 = inlined_call_operand.hbm [shape: f32[4], index: 0, kind: input, shape index: {}]   ;;  %s1003_s1 = inlined_call_operand.vmem [shape: f32[3], index: 1, kind: input, shape index: {}]   ;;  %s1004_s2 = inlined_call_operand.vmem [shape: f32[3], index: 2, kind: input, shape index: {}]   ;;  %s1005_s3 = inlined_call_operand.hbm [shape: f32[8,128], index: 3, kind: input, shape index: {}]   ;;  %s1006_s4 = inlined_call_operand.hbm [shape: f32[8,128], index: 4, kind: input, shape index: {}]   ;;  %s1007_s5 = inlined_call_operand.hbm [shape: bf16[128,128], index: 5, kind: input, shape index: {}]   ;;  %s1008_s6 = inlined_call_operand.vmem [shape: f32[16,128], index: 6, kind: input, shape index: {}]   ;;  %s1009_s7 = inlined_call_operand.hbm [shape: f32[16,128], index: 7, kind: input, shape index: {}]   ;;  %s1010_s8 = inlined_call_operand.hbm [shape: f32[3,128], index: 8, kind: output, shape index: {0}]   ;;  %s1011_s9 = inlined_call_operand.hbm [shape: f32[16,128], index: 9, kind: output, shape index: {1}]   ;;  %s1012_s10 = inlined_call_operand.vmem [shape: f32[3], index: 10, kind: output, shape index: {2}]  }
   0x1   :  { %17 = vsyncpa [#allocation6], 0 }
   0x2   :  { %18 = vsyncpa [#allocation10], 0 }
   0x3   :  { %19 = vsyncpa [#allocation3], 0 }
   0x4   :  { %20 = vsyncpa [#allocation13], 0 }
   0x5   :  { %21 = vsyncpa [#allocation16], 0 }
   0x6   :  { %22 = vsyncpa [#allocation4], 0 }
   0x7   :  { %23 = vsyncpa [#allocation19], 0 }
   0x8   :  { %24 = vsyncpa [#allocation7], 0  ;;  %s780_s13 = smov [#allocation12]   ;;  %s39_s17 = sshll.u32 %s1003_s1, 4  ;;  %s855_s17 = int_to_ptr.vmem [resolvable:$true] %s39_s17 }
   0x9   :  { %s69_s14 = sshll.u32 %s780_s13, 4  ;;  %s584_s20 = scalar_lea.hbm %s1006_s4, 128  ;;  %s70_s14 = int_to_ptr.vmem [resolvable:$true] %s69_s14 }
   0xa   :  { %p585_p0 = scmp.ne.s32.totalorder %s1006_s4, %s584_s20  ;;  %p588_p1 = scmp.lt.u32.totalorder %s584_s20, %s1006_s4 }
   0xc   :  { %p590_p2 = pnand %p588_p1, %p585_p0 }
   0xe   :  { %593 = shalt.err (!%p590_p2)
}
   0xf   :  { %s594_s25 = scalar_lea.vmem %s70_s14, 128  ;;  %p599_p4 = scmp.lt.s32.totalorder %s70_s14, %s70_s14 }
  0x10   :  { %p595_p3 = scmp.ne.s32.totalorder %s70_s14, %s594_s25  ;;  %p600_p5 = scmp.lt.s32.totalorder %s594_s25, %s594_s25 }
  0x12   :  { %p601_p6 = por %p600_p5, %p599_p4 }
  0x14   :  { %p602_p7 = pnand %p601_p6, %p595_p3 }
  0x16   :  { %605 = shalt.err (!%p602_p7)
}
  0x17   :  { %72 = dma.hbm_to_vmem [thread:$0]  %s1006_s4, 128, %s70_s14, [#allocation13]  }
  0x18   :  { %s606_s29 = scalar_lea.hbm %s1002_s0, 16 }
  0x19   :  { %p607_p8 = scmp.ne.s32.totalorder %s1002_s0, %s606_s29  ;;  %p610_p9 = scmp.lt.u32.totalorder %s606_s29, %s1002_s0 }
  0x1b   :  { %p612_p10 = pnand %p610_p9, %p607_p8 }
  0x1d   :  { %615 = shalt.err (!%p612_p10)
}
  0x1e   :  { %s781_s15 = smov [#allocation2]   ;;  %s49_s19 = sshll.u32 %s1004_s2, 4  ;;  %s50_s19 = int_to_ptr.vmem [resolvable:$true] %s49_s19 }
  0x1f   :  { %32 = dma.hbm_to_smem %s1002_s0, 16, %s781_s15, [#allocation5]  }
  0x20   :  { %s616_s20 = scalar_lea.vmem %s855_s17, 16  ;;  %p621_p12 = scmp.lt.s32.totalorder %s855_s17, %s855_s17 }
  0x21   :  { %p617_p11 = scmp.ne.s32.totalorder %s855_s17, %s616_s20  ;;  %p622_p13 = scmp.lt.s32.totalorder %s616_s20, %s616_s20 }
  0x23   :  { %p623_p0 = por %p622_p13, %p621_p12 }
  0x25   :  { %p624_p1 = pnand %p623_p0, %p617_p11 }
  0x27   :  { %627 = shalt.err (!%p624_p1)
}
  0x28   :  { %s782_s21 = smov [#allocation8]   ;;  %s628_s22 = scalar_lea.vmem %s50_s19, 16 }
  0x29   :  { %42 = dma.vmem_to_smem %s855_s17, 16, %s782_s21, [#allocation6]  }
  0x2a   :  { %p629_p2 = scmp.ne.s32.totalorder %s50_s19, %s628_s22  ;;  %p633_p3 = scmp.lt.s32.totalorder %s50_s19, %s50_s19 }
  0x2b   :  { %p634_p4 = scmp.lt.s32.totalorder %s628_s22, %s628_s22 }
  0x2d   :  { %p635_p5 = por %p634_p4, %p633_p3 }
  0x2f   :  { %p636_p6 = pnand %p635_p5, %p629_p2 }
  0x31   :  { %639 = shalt.err (!%p636_p6)
}
  0x32   :  { %s783_s0 = smov [#allocation9]   ;;  %s784_s2 = smov [#allocation11]  }
  0x33   :  { %52 = dma.vmem_to_smem %s50_s19, 16, %s783_s0, [#allocation10]  }
  0x34   :  { %s59_s23 = sshll.u32 %s784_s2, 4  ;;  %s785_s24 = smov [#allocation14]   ;;  %s60_s23 = int_to_ptr.vmem [resolvable:$true] %s59_s23 }
  0x35   :  { %s78_s25 = sshll.u32 %s785_s24, 4  ;;  %s640_s17 = scalar_lea.hbm %s1005_s3, 128  ;;  %s889_s25 = int_to_ptr.vmem [resolvable:$true] %s78_s25 }
  0x36   :  { %p641_p7 = scmp.ne.s32.totalorder %s1005_s3, %s640_s17  ;;  %p644_p8 = scmp.lt.u32.totalorder %s640_s17, %s1005_s3 }
  0x38   :  { %p646_p9 = pnand %p644_p8, %p641_p7 }
  0x3a   :  { %649 = shalt.err (!%p646_p9)
}
  0x3b   :  { %s650_s11 = scalar_lea.vmem %s60_s23, 128  ;;  %p655_p11 = scmp.lt.s32.totalorder %s60_s23, %s60_s23 }
  0x3c   :  { %p651_p10 = scmp.ne.s32.totalorder %s60_s23, %s650_s11  ;;  %p656_p12 = scmp.lt.s32.totalorder %s650_s11, %s650_s11 }
  0x3e   :  { %p657_p13 = por %p656_p12, %p655_p11 }
  0x40   :  { %p658_p0 = pnand %p657_p13, %p651_p10 }
  0x42   :  { %661 = shalt.err (!%p658_p0)
}
  0x43   :  { %62 = dma.hbm_to_vmem [thread:$0]  %s1005_s3, 128, %s60_s23, [#allocation3]  }
  0x44   :  { %s662_s18 = scalar_lea.hbm %s1007_s5, 1024 }
  0x45   :  { %p663_p1 = scmp.ne.s32.totalorder %s1007_s5, %s662_s18  ;;  %p666_p2 = scmp.lt.u32.totalorder %s662_s18, %s1007_s5 }
  0x47   :  { %p668_p3 = pnand %p666_p2, %p663_p1 }
  0x49   :  { %671 = shalt.err (!%p668_p3)
}
  0x4a   :  { %s672_s21 = scalar_lea.vmem %s889_s25, 1024  ;;  %p677_p5 = scmp.lt.s32.totalorder %s889_s25, %s889_s25 }
  0x4b   :  { %p673_p4 = scmp.ne.s32.totalorder %s889_s25, %s672_s21  ;;  %p678_p6 = scmp.lt.s32.totalorder %s672_s21, %s672_s21 }
  0x4d   :  { %p679_p7 = por %p678_p6, %p677_p5 }
  0x4f   :  { %p680_p8 = pnand %p679_p7, %p673_p4 }
  0x51   :  { %683 = shalt.err (!%p680_p8)
}
  0x52   :  { %s786_s3 = smov 64   ;;  %s787_s22 = smov 4  }
  0x53   :  { %84 = dma.hbm_to_vmem [thread:$0]  %s1007_s5, 1024, %s889_s25, [#allocation13], %s786_s3, %s786_s3, %s787_s22  }
  0x54   :  { %s788_s23 = smov [#allocation15]   ;;  %s684_s17 = scalar_lea.hbm %s1009_s7, 256 }
  0x55   :  { %s92_s24 = sshll.u32 %s788_s23, 4  ;;  %p685_p9 = scmp.ne.s32.totalorder %s1009_s7, %s684_s17  ;;  %s93_s24 = int_to_ptr.vmem [resolvable:$true] %s92_s24 }
  0x56   :  { %p688_p10 = scmp.lt.u32.totalorder %s684_s17, %s1009_s7 }
  0x58   :  { %p690_p11 = pnand %p688_p10, %p685_p9 }
  0x5a   :  { %693 = shalt.err (!%p690_p11)
}
  0x5b   :  { %s694_s11 = scalar_lea.vmem %s93_s24, 256  ;;  %p699_p13 = scmp.lt.s32.totalorder %s93_s24, %s93_s24 }
  0x5c   :  { %p695_p12 = scmp.ne.s32.totalorder %s93_s24, %s694_s11  ;;  %p700_p0 = scmp.lt.s32.totalorder %s694_s11, %s694_s11 }
  0x5e   :  { %p701_p1 = por %p700_p0, %p699_p13 }
  0x60   :  { %p702_p2 = pnand %p701_p1, %p695_p12 }
  0x62   :  { %705 = shalt.err (!%p702_p2)
}
  0x63   :  { %s789_s5 = smov 128   ;;  %s790_s25 = smov 8  }
  0x64   :  { %98 = dma.hbm_to_vmem [thread:$0]  %s1009_s7, 256, %s93_s24, [#allocation16], %s789_s5, %s789_s5, %s790_s25  }
  0x65   :  { %762 = dma.done.wait [#allocation5], 16  }
  0x66   :  { %763 = vsyncadd [#allocation5], 4294967280 }
  0x67   :  { %764 = dma.done.wait [#allocation6], 16  }
  0x68   :  { %765 = vsyncadd [#allocation6], 4294967280 }
  0x69   :  { %766 = dma.done.wait [#allocation10], 16  }
  0x6a   :  { %767 = vsyncadd [#allocation10], 4294967280 }
  0x6b   :  { %768 = dma.done.wait [#allocation3], 128  }
  0x6c   :  { %769 = vsyncadd [#allocation3], 4294967168 }
  0x6d   :  { %770 = dma.done.wait [#allocation13], 1152  }
  0x6e   :  { %771 = vsyncadd [#allocation13], 4294966144 }
  0x6f   :  { %772 = dma.done.wait [#allocation16], 256  }
  0x70   :  { %773 = vsyncadd [#allocation16], 4294967040 }
  0x71   :  { %120 = sfence }
  0x72   :  { %v445_v0 = vld [vmem:[#allocation14] sm:$0xff]   ;;  %v791_v1 = vmov 0.0|0.0   ;;  %vm792_vm0 = vmmov 0   ;;  %v793_v2 = vmov 0.0   ;;  %s226_s7 = sld [smem:[#allocation9]]  ;;  %s441_s15 = sld [smem:[#allocation9 + $0x1]]  ;;  %v257_v25 = vlaneseq }
  0x73   :  { %535 = vmatprep.subr.bf16.mxu0 %v791_v1  ;;  %532 = vmatprep.mubr.msk.f32.mxu0 %vm792_vm0, %v793_v2  ;;  %v476_v3 = vld [vmem:[#allocation14 + $0x8] sm:$0xff]   ;;  %v229_v4 = vld [vmem:[#allocation15] sm:$0xff]  ;;  %v477_v6 = vld [vmem:[#allocation14 + $0x10] sm:$0xff]   ;;  %vm140_vm2 = vcmask 1042432   ;;  %s943_s19 = sld [smem:[#allocation2 + $0x1]]  ;;  %s945_s20 = sld [smem:[#allocation2 + $0x2]] }
  0x74   :  { %537 = vmatpush3.bf16.msra.mxu0 %v445_v0  ;;  %v230_v5 = vld [vmem:[#allocation15 + $0x8] sm:$0xff]  ;;  %v478_v13 = vld [vmem:[#allocation14 + $0x18] sm:$0xff]   ;;  %v239_v14 = vld [vmem:[%s1008_s6] sm:$0xff]  ;;  %v258_v27 = vshrl.u32 %v257_v25, 7  ;;  %s947_s21 = sld [smem:[#allocation2 + $0x3]]  ;;  %s194_s30 = sld [smem:[#allocation8]] }
  0x75   :  { %538 = vmatprep.subr.bf16.mxu0 %v791_v1  ;;  %v240_v15 = vld [vmem:[%s1008_s6 + $0x8] sm:$0xff]  ;;  %v479_v20 = vld [vmem:[#allocation14 + $0x20] sm:$0xff]   ;;  %v481_v26 = vld [vmem:[#allocation14 + $0x30] sm:$0xff]   ;;  %s941_s6 = sld [smem:[#allocation2]]  ;;  %s439_s11 = sld [smem:[#allocation8 + $0x1]] }
  0x76   :  { %v480_v24 = vld [vmem:[#allocation14 + $0x28] sm:$0xff]   ;;  %v260_v28 = vld [vmem:[#allocation11] sm:$0xff]  ;;  %v261_v29 = vld [vmem:[#allocation12] sm:$0xff]  ;;  %vm259_vm1 = vcmp.lt.s32.totalorder %v258_v27, 3  ;;  %s440_s12 = sld [smem:[#allocation8 + $0x2]]  ;;  %s795_s16 = smov [#allocation18]  }
  0x77   :  { %v482_v30 = vld [vmem:[#allocation14 + $0x38] sm:$0xff]   ;;  %v262_v31 = vsub.f32 %v260_v28, %v261_v29  ;;  %v139_v32 = vld [vmem:[#allocation11] sm:$0x7]  ;;  %s400_s18 = sshll.u32 %s795_s16, 4  ;;  %s964_s18 = int_to_ptr.vmem [resolvable:$true] %s400_s18 }
  0x78   :  { %540 = vmatpush3.bf16.msra.mxu0 %v476_v3  ;;  %v231_v7 = vstv %s226_s7  ;;  %v236_v10 = vstv %s441_s15  ;;  %v141_v33 = vsel %vm140_vm2, %v139_v32, 0.0  ;;  %s794_s7 = smov [#allocation17]  }
  0x79   :  { %541 = vmatprep.subr.bf16.mxu0 %v791_v1  ;;  %v232_v8 = vmul.f32 %v231_v7, %v229_v4  ;;  %v233_v9 = vmul.f32 %v231_v7, %v230_v5  ;;  %142 = vadd.xlane.f32.xlu1 %v141_v33  ;;  %s126_s22 = smul.f32 %s943_s19, %s943_s19  ;;  %s391_s15 = sshll.u32 %s794_s7, 4  ;;  %s392_s15 = int_to_ptr.vmem [resolvable:$true] %s391_s15 }
  0x7a   :  { %s128_s0 = smul.f32 %s945_s20, %s945_s20  ;;  %v195_v28 = vstv %s194_s30  ;;  %s706_s4 = scalar_lea.vmem %s392_s15, 64 }
  0x7b   :  { %v234_v11 = vmax.f32 %v232_v8, 0.0  ;;  %v235_v12 = vmax.f32 %v233_v9, 0.0  ;;  %s125_s3 = smul.f32 %s941_s6, %s941_s6  ;;  %v209_v29 = vstv %s439_s11  ;;  %p707_p3 = scmp.ne.s32.totalorder %s392_s15, %s706_s4 }
  0x7c   :  { %543 = vmatpush3.bf16.msra.mxu0 %v477_v6  ;;  %s130_s23 = smul.f32 %s947_s21, %s947_s21  ;;  %p711_p4 = scmp.lt.s32.totalorder %s392_s15, %s392_s15 }
  0x7d   :  { %544 = vmatprep.subr.bf16.mxu0 %v791_v1  ;;  %v237_v16 = vmin.f32 %v236_v10, %v234_v11  ;;  %v238_v17 = vmin.f32 %v236_v10, %v235_v12  ;;  %s127_s2 = sadd.f32 %s126_s22, %s125_s3  ;;  %p712_p5 = scmp.lt.s32.totalorder %s706_s4, %s706_s4 }
  0x7f   :  { %v241_v18 = vsub.f32 %v237_v16, %v239_v14  ;;  %v242_v19 = vsub.f32 %v238_v17, %v240_v15  ;;  %s129_s24 = sadd.f32 %s128_s0, %s127_s2  ;;  %p713_p6 = por %p712_p5, %p711_p4 }
  0x80   :  { %546 = vmatpush3.bf16.msra.mxu0 %v478_v13 }
  0x81   :  { %547 = vmatprep.subr.bf16.mxu0 %v791_v1  ;;  %v243_v21 = vmul.f32 %v241_v18, %v241_v18  ;;  %v244_v22 = vmul.f32 %v242_v19, %v242_v19  ;;  %s131_s1 = sadd.f32 %s130_s23, %s129_s24  ;;  %p714_p7 = pnand %p713_p6, %p707_p3 }
  0x83   :  { %v247_v23 = vadd.f32 %v244_v22, %v243_v21  ;;  %245 = vst [vmem:[#allocation18] sm:$0xff] %v243_v21  ;;  %246 = vst [vmem:[#allocation18 + $0x8] sm:$0xff] %v244_v22  ;;  %v132_v34 = vstv %s131_s1 }
  0x84   :  { %549 = vmatpush3.bf16.msra.mxu0 %v479_v20  ;;  %582 = vrsqrt.f32 %v132_v34 }
  0x85   :  { %550 = vmatprep.subr.bf16.mxu0 %v791_v1  ;;  %248 = vadd.xlane.f32.xlu0 %v247_v23 }
  0x88   :  { %552 = vmatpush3.bf16.msra.mxu0 %v480_v24 }
  0x89   :  { %553 = vmatprep.subr.bf16.mxu0 %v791_v1 }
  0x8c   :  { %555 = vmatpush3.bf16.msra.mxu0 %v481_v26 }
  0x8d   :  { %556 = vmatprep.subr.bf16.mxu0 %v791_v1 }
  0x8e   :  { %v583_v35 = vpop.eup %582 }
  0x8f   :  { %559 = vpush %v583_v35 }
  0x90   :  { %558 = vmatpush3.bf16.msra.mxu0 %v482_v30 }
  0x93   :  { %533 = vmatmul.mubr.msk.f32.vlgmr.msra.gmra.mrb[0].mxu0 %vm259_vm1, %v262_v31 }
  0xc0   :  { %s560_s26 = spop %559 }
  0xc1   :  { %s135_s17 = smul.f32 %s560_s26, %s941_s6 }
  0xc2   :  { %s136_s27 = smul.f32 %s560_s26, %s943_s19 }
  0xc3   :  { %s137_s28 = smul.f32 %s560_s26, %s945_s20  ;;  %v155_v49 = vstv %s135_s17 }
  0xc4   :  { %v147_v50 = vstv %s136_s27  ;;  %s138_s29 = smul.f32 %s560_s26, %s947_s21 }
  0xc5   :  { %v149_v52 = vstv %s137_s28 }
  0xc6   :  { %v183_v6 = vstv %s138_s29 }
 0x106   :  { %v143_v46 = vpop.xlane.xlu1 %142 }
 0x107   :  { %v145_v47 = vmul.f32 0.0078125, %v143_v46 }
 0x109   :  { %v146_v48 = vsub.f32 %v139_v32, %v145_v47  ;;  %v223_v32 = vstv %s440_s12 }
 0x10b   :  { %v148_v51 = vmul.f32 %v147_v50, %v146_v48  ;;  %v156_v53 = vmul.f32 %v155_v49, %v146_v48  ;;  %v150_v54 = vmul.f32 %v149_v52, %v146_v48 }
 0x10d   :  { %v158_v55 = vrot.slane %v156_v53, 2  ;;  %v162_v56 = vrot.slane %v148_v51, 7  ;;  %v152_v57 = vrot.slane %v150_v54, 7 }
 0x10f   :  { %v160_v58 = vsub.f32 %v150_v54, %v158_v55  ;;  %v164_v59 = vsub.f32 %v156_v53, %v162_v56  ;;  %v154_v60 = vsub.f32 %v148_v51, %v152_v57 }
 0x111   :  { %v166_v61 = vmul.f32 %v160_v58, %v149_v52  ;;  %v172_v62 = vmul.f32 %v164_v59, %v155_v49  ;;  %v178_v63 = vmul.f32 %v154_v60, %v147_v50  ;;  %v165_v0 = vmul.f32 %v164_v59, %v147_v50 }
 0x112   :  { %v249_v36 = vpop.xlane.xlu0 %248  ;;  %v177_v1 = vmul.f32 %v160_v58, %v155_v49  ;;  %v171_v3 = vmul.f32 %v154_v60, %v149_v52  ;;  %v184_v10 = vmul.f32 %v183_v6, %v154_v60  ;;  %v198_v11 = vmul.f32 %v183_v6, %v160_v58 }
 0x113   :  { %v250_v40 = vrot.slane %v249_v36, 4  ;;  %v168_v2 = vrot.slane %v166_v61, 7  ;;  %v174_v4 = vrot.slane %v172_v62, 7  ;;  %v180_v5 = vrot.slane %v178_v63, 2 }
 0x114   :  { %v212_v12 = vmul.f32 %v183_v6, %v164_v59 }
 0x115   :  { %v251_v41 = vadd.f32 %v250_v40, %v249_v36  ;;  %v170_v7 = vsub.f32 %v165_v0, %v168_v2  ;;  %v176_v8 = vsub.f32 %v171_v3, %v174_v4  ;;  %v182_v9 = vsub.f32 %v177_v1, %v180_v5 }
 0x117   :  { %v252_v42 = vrot.slane %v251_v41, 2  ;;  %v186_v13 = vrot.slane %v170_v7, 7  ;;  %v200_v14 = vrot.slane %v176_v8, 2  ;;  %v214_v15 = vrot.slane %v182_v9, 7 }
 0x119   :  { %v253_v43 = vadd.f32 %v252_v42, %v251_v41  ;;  %v188_v16 = vadd.f32 %v186_v13, %v184_v10  ;;  %v202_v17 = vadd.f32 %v200_v14, %v198_v11  ;;  %v216_v18 = vadd.f32 %v214_v15, %v212_v12 }
 0x11b   :  { %v254_v44 = vrot.slane %v253_v43, 1  ;;  %v189_v19 = vmul.f32 2.0, %v188_v16  ;;  %v203_v20 = vmul.f32 2.0, %v202_v17  ;;  %v217_v21 = vmul.f32 2.0, %v216_v18 }
 0x11d   :  { %v255_v45 = vadd.f32 %v254_v44, %v253_v43  ;;  %v191_v22 = vrot.slane %v189_v19, 2  ;;  %v205_v23 = vrot.slane %v203_v20, 7  ;;  %v219_v24 = vrot.slane %v217_v21, 7 }
 0x11f   :  { %561 = vpush %v255_v45  ;;  %v193_v25 = vadd.f32 %v191_v22, %v146_v48  ;;  %v207_v26 = vadd.f32 %v205_v23, %v146_v48  ;;  %v221_v27 = vadd.f32 %v219_v24, %v146_v48 }
 0x121   :  { %v196_v30 = vadd.f32 %v195_v28, %v193_v25  ;;  %v210_v31 = vadd.f32 %v209_v29, %v207_v26  ;;  %v224_v33 = vadd.f32 %v223_v32, %v221_v27 }
 0x123   :  { %197 = vst [vmem:[#allocation17] sm:$0x1] %v196_v30  ;;  %211 = vst [vmem:[#allocation17] sm:$0x2] %v210_v31 }
 0x124   :  { %225 = vst [vmem:[#allocation17] sm:$0x4] %v224_v33 }
 0x150   :  { %s961_s13 = spop %561 }
 0x151   :  { %382 = sst [smem:[#allocation20 + $0x1]] %s961_s13 }
 0x166   :  { %v362_v37 = vpop.f32.mrb[0].mxu0 }
 0x167   :  { %v367_v38 = vmul.f32 %v362_v37, %v362_v37  ;;  %v534_v39 = vpop.f32.mrb[1].mxu0 }
 0x169   :  { %368 = vadd.xlane.f32.xlu0 %v367_v38 }
 0x16a   :  { %717 = shalt.err (!%p714_p7)
}
 0x16b   :  { %s718_s19 = scalar_lea.hbm %s1010_s8, 64 }
 0x16c   :  { %p719_p8 = scmp.ne.s32.totalorder %s1010_s8, %s718_s19  ;;  %p722_p9 = scmp.lt.u32.totalorder %s718_s19, %s1010_s8 }
 0x16e   :  { %p724_p10 = pnand %p722_p9, %p719_p8 }
 0x170   :  { %727 = shalt.err (!%p724_p10)
}
 0x171   :  { %394 = dma.vmem_to_hbm [thread:$0]  %s392_s15, 64, %s1010_s8, [#allocation4]  }
 0x172   :  { %s728_s23 = scalar_lea.vmem %s964_s18, 256  ;;  %p733_p12 = scmp.lt.s32.totalorder %s964_s18, %s964_s18 }
 0x173   :  { %p729_p11 = scmp.ne.s32.totalorder %s964_s18, %s728_s23  ;;  %p734_p13 = scmp.lt.s32.totalorder %s728_s23, %s728_s23 }
 0x175   :  { %p735_p0 = por %p734_p13, %p733_p12 }
 0x177   :  { %p736_p1 = pnand %p735_p0, %p729_p11 }
 0x179   :  { %739 = shalt.err (!%p736_p1)
}
 0x17a   :  { %s740_s26 = scalar_lea.hbm %s1011_s9, 256 }
 0x17b   :  { %p741_p2 = scmp.ne.s32.totalorder %s1011_s9, %s740_s26  ;;  %p744_p3 = scmp.lt.u32.totalorder %s740_s26, %s1011_s9 }
 0x17d   :  { %p746_p4 = pnand %p744_p3, %p741_p2 }
 0x17f   :  { %749 = shalt.err (!%p746_p4)
}
 0x180   :  { %406 = dma.vmem_to_hbm [thread:$0]  %s964_s18, 256, %s1011_s9, [#allocation19], %s789_s5, %s789_s5, %s790_s25  }
 0x181   :  { %s442_s11 = sld [smem:[#allocation9 + $0x2]]  ;;  %s413_s4 = sshll.u32 %s1012_s10, 4  ;;  %s414_s4 = int_to_ptr.vmem [resolvable:$true] %s413_s4 }
 0x182   :  { %s750_s9 = scalar_lea.vmem %s414_s4, 16  ;;  %p755_p6 = scmp.lt.s32.totalorder %s414_s4, %s414_s4 }
 0x183   :  { %p751_p5 = scmp.ne.s32.totalorder %s414_s4, %s750_s9  ;;  %p756_p7 = scmp.lt.s32.totalorder %s750_s9, %s750_s9 }
 0x185   :  { %p757_p8 = por %p756_p7, %p755_p6 }
 0x187   :  { %s366_s12 = smul.f32 0.5, %s442_s11  ;;  %p758_p9 = pnand %p757_p8, %p751_p5 }
 0x1f6   :  { %v369_v34 = vpop.xlane.xlu0 %368 }
 0x1f7   :  { %v370_v35 = vrot.slane %v369_v34, 4 }
 0x1f9   :  { %v371_v36 = vadd.f32 %v370_v35, %v369_v34 }
 0x1fb   :  { %v372_v37 = vrot.slane %v371_v36, 2 }
 0x1fd   :  { %v373_v38 = vadd.f32 %v372_v37, %v371_v36 }
 0x1ff   :  { %v374_v39 = vrot.slane %v373_v38, 1 }
 0x201   :  { %v375_v40 = vadd.f32 %v374_v39, %v373_v38 }
 0x203   :  { %563 = vpush %v375_v40 }
 0x234   :  { %s564_s7 = spop %563 }
 0x235   :  { %s377_s14 = smul.f32 %s564_s7, %s366_s12 }
 0x237   :  { %s378_s6 = sadd.f32 %s961_s13, %s377_s14 }
 0x238   :  { %384 = sst [smem:[#allocation20 + $0x2]] %s377_s14 }
 0x239   :  { %380 = sst [smem:[#allocation20]] %s378_s6 }
 0x23a   :  { %761 = shalt.err (!%p758_p9)
}
 0x23b   :  { %s796_s5 = smov [#allocation20]  }
 0x23c   :  { %416 = dma.smem_to_vmem %s796_s5, 16, %s414_s4, [#allocation7]  }
 0x23d   :  { %774 = dma.done.wait [#allocation4], 64  }
 0x23e   :  { %775 = vsyncadd [#allocation4], 4294967232 }
 0x23f   :  { %776 = dma.done.wait [#allocation19], 256  }
 0x240   :  { %777 = vsyncadd [#allocation19], 4294967040 }
 0x241   :  { %778 = dma.done.wait [#allocation7], 16  }
 0x242   :  { %779 = vsyncadd [#allocation7], 4294967280 }
 0x243   :  { %426 = sfence }
 0x244   :  { %427 = vsyncpa [#allocation3], 1 }
 0x245   :  { %428 = vsyncpa [#allocation13], 1 }
 0x246   :  { %429 = vsyncpa [#allocation16], 1 }
 0x247   :  { %430 = vsyncpa [#allocation4], 1 }
 0x248   :  { %431 = vsyncpa [#allocation19], 1 }
 0x249   :  { %432 = vsyncpa [#allocation5], 1 }
 0x24a   :  { %433 = vsyncpa [#allocation6], 1 }
 0x24b   :  { %434 = vsyncpa [#allocation10], 1 }
 0x24c   :  { %435 = vsyncpa [#allocation7], 1 }

</bundles_post_ra>
